<compile_context>
chip_gen: v5e
topology: v5e:2x2
jax: 0.10.0
libtpu: 0.0.40
codegen_flags: <defaults>
</compile_context>

<pallas_src>
import math

import jax
import jax.numpy as jnp
from jax.experimental import pallas as pl
from jax.experimental.pallas import tpu as pltpu

H1_PAD = 512    # 400 rounded up to a multiple of 128
H2_PAD = 384    # 300 rounded up to a multiple of 128 (do NOT pad to 512)
OUT_PAD = 128   # lane-dense output slab; real action_dim sliced out in wrapper
TB_MAX = 512    # max batch-tile rows (amortizes ~0.35 us/grid-step overhead)


def _round_up(x, m):
    return (x + m - 1) // m * m


def _choose_tiling(B):
    """Pick (TB, padded_B, n_blocks): TB <= TB_MAX, >=2 even blocks if B > 128."""
    bp8 = _round_up(B, 8)
    if bp8 <= 128:
        return bp8, bp8, 1                    # tiny batch: one block
    n = pl.cdiv(bp8, TB_MAX)
    n = max(2, n)
    n = n + (n & 1)                           # even block count for 2-TC chips
    tb = _round_up(pl.cdiv(bp8, n), 8)
    return tb, tb * n, n


def actor_kernel(x_ref, w1_ref, b1_ref, w2_ref, b2_ref, w3_ref, b3_ref, o_ref):
    # x tile: (TB, state_dim) bf16 (cast + pad done in the wrapper)
    x = x_ref[...]

    # layer 1: Linear(state_dim, 400[->512]) + ReLU   (f32 accumulate)
    h1 = jnp.dot(x, w1_ref[...], preferred_element_type=jnp.float32)
    h1 = jnp.maximum(h1 + b1_ref[...], 0.0)

    # layer 2: Linear(400[->512], 300[->384]) + ReLU
    h2 = jnp.dot(h1.astype(jnp.bfloat16), w2_ref[...],
                 preferred_element_type=jnp.float32)
    h2 = jnp.maximum(h2 + b2_ref[...], 0.0)

    # layer 3: Linear(300[->384], action_dim[->128]) + tanh, stored bf16
    y = jnp.dot(h2.astype(jnp.bfloat16), w3_ref[...],
                preferred_element_type=jnp.float32)
    o_ref[...] = jnp.tanh(y + b3_ref[...]).astype(o_ref.dtype)


def actor_forward(state, params, action_dim):
    """state: (B, state_dim) f32. Returns (B, action_dim) f32."""
    w1, b1, w2, b2, w3, b3 = params
    B, state_dim = state.shape

    TB, Bp, n_blocks = _choose_tiling(B)

    # Wrapper-side bf16 cast + batch zero-pad: kernel sees a bf16 tile.
    state_bf16 = state.astype(jnp.bfloat16)
    if Bp != B:
        state_bf16 = jnp.zeros((Bp, state_dim), jnp.bfloat16).at[:B].set(state_bf16)

    const2d = lambda i: (0, 0)
    resident = dict(pipeline_mode=pl.Buffered(1))   # constant index: 1 buffer

    grid_spec = pltpu.PrefetchScalarGridSpec(
        num_scalar_prefetch=0,
        grid=(n_blocks,),
        in_specs=[
            pl.BlockSpec((TB, state_dim), lambda i: (i, 0)),            # pipelined
            pl.BlockSpec((state_dim, H1_PAD), const2d, **resident),     # VMEM-resident
            pl.BlockSpec((1, H1_PAD), const2d, **resident),
            pl.BlockSpec((H1_PAD, H2_PAD), const2d, **resident),
            pl.BlockSpec((1, H2_PAD), const2d, **resident),
            pl.BlockSpec((H2_PAD, OUT_PAD), const2d, **resident),
            pl.BlockSpec((1, OUT_PAD), const2d, **resident),
        ],
        out_specs=pl.BlockSpec((TB, OUT_PAD), lambda i: (i, 0)),
    )

    out = pl.pallas_call(
        actor_kernel,
        out_shape=jax.ShapeDtypeStruct((Bp, OUT_PAD), jnp.bfloat16),
        grid_spec=grid_spec,
        compiler_params=pltpu.CompilerParams(
            dimension_semantics=(pltpu.PARALLEL,),  # batch axis shared across TCs
        ),
    )(state_bf16, w1, b1, w2, b2, w3, b3)

    return out[:B, :action_dim].astype(jnp.float32)


def init_actor_params(key, state_dim, action_dim):
    """Deterministic init mirroring the PyTorch module's __init__.

    * w1, w2: U(-1/sqrt(fan_in), 1/sqrt(fan_in)) (explicit in the module)
    * w3:     U(-0.003, 0.003)                   (explicit in the module)
    * b1, b2, b3: PyTorch nn.Linear default U(-1/sqrt(fan_in), 1/sqrt(fan_in))
      (the module never overrides the biases).
    Weights stored (in, out)-major in bf16, zero-padded to lane-aligned dims
    (400->512, 300->384, action_dim->128); padding is numerically exact.
    """
    k = jax.random.split(key, 6)
    r1 = 1.0 / math.sqrt(state_dim)
    r2 = 1.0 / math.sqrt(400)
    r3 = 1.0 / math.sqrt(300)

    def padded_uniform(kk, shape, pad_shape, lo, hi, dtype):
        w = jax.random.uniform(kk, shape, jnp.float32, lo, hi)
        out = jnp.zeros(pad_shape, jnp.float32).at[: shape[0], : shape[1]].set(w)
        return out.astype(dtype)

    w1 = padded_uniform(k[0], (state_dim, 400), (state_dim, H1_PAD), -r1, r1, jnp.bfloat16)
    b1 = padded_uniform(k[1], (1, 400), (1, H1_PAD), -r1, r1, jnp.float32)
    w2 = padded_uniform(k[2], (400, 300), (H1_PAD, H2_PAD), -r2, r2, jnp.bfloat16)
    b2 = padded_uniform(k[3], (1, 300), (1, H2_PAD), -r2, r2, jnp.float32)
    w3 = padded_uniform(k[4], (300, action_dim), (H2_PAD, OUT_PAD), -0.003, 0.003, jnp.bfloat16)
    b3 = padded_uniform(k[5], (1, action_dim), (1, OUT_PAD), -r3, r3, jnp.float32)
    return (w1, b1, w2, b2, w3, b3)


def actor_ref(state, params, action_dim):
    """Pure-JAX reference mirroring the kernel's numerics (bf16 weights,
    bf16 activation casts, f32 accumulation, bf16-rounded output)."""
    w1, b1, w2, b2, w3, b3 = params
    x = state.astype(jnp.bfloat16)
    h1 = jnp.maximum(jnp.dot(x, w1, preferred_element_type=jnp.float32) + b1, 0.0)
    h2 = jnp.maximum(
        jnp.dot(h1.astype(jnp.bfloat16), w2, preferred_element_type=jnp.float32) + b2, 0.0)
    y = jnp.tanh(
        jnp.dot(h2.astype(jnp.bfloat16), w3, preferred_element_type=jnp.float32) + b3)
    return y.astype(jnp.bfloat16).astype(jnp.float32)[:, :action_dim]


if __name__ == "__main__":
    key = jax.random.PRNGKey(0)
    k_param, k_state, k_state2 = jax.random.split(key, 3)

    state_dim = 16
    action_dim = 4
    params = init_actor_params(k_param, state_dim, action_dim)

    # Small-batch check (single block path).
    batch = 2
    state = jax.random.normal(k_state, (batch, state_dim), jnp.float32)
    out = jax.block_until_ready(actor_forward(state, params, action_dim))
    ref = actor_ref(state, params, action_dim)
    assert out.shape == (batch, action_dim)
    assert jnp.allclose(out, ref, atol=1e-2, rtol=1e-2), (
        f"max abs err {jnp.max(jnp.abs(out - ref))}")

    # Larger-batch check (exercises the multi-block, even-grid path).
    batch2 = 256
    state2 = jax.random.normal(k_state2, (batch2, state_dim), jnp.float32)
    out2 = jax.block_until_ready(actor_forward(state2, params, action_dim))
    ref2 = actor_ref(state2, params, action_dim)
    assert out2.shape == (batch2, action_dim)
    assert jnp.allclose(out2, ref2, atol=1e-2, rtol=1e-2), (
        f"max abs err {jnp.max(jnp.abs(out2 - ref2))}")

    print("KERNEL_OK")
</pallas_src>

<mosaic_0001>
module attributes {stable_mosaic.version = 11 : i64} {
  func.func @actor_kernel(%arg0: i32, %arg1: memref<8x16xbf16, #tpu.memory_space<vmem>>, %arg2: memref<16x512xbf16, #tpu.memory_space<vmem>>, %arg3: memref<1x512xf32, #tpu.memory_space<vmem>>, %arg4: memref<512x384xbf16, #tpu.memory_space<vmem>>, %arg5: memref<1x384xf32, #tpu.memory_space<vmem>>, %arg6: memref<384x128xbf16, #tpu.memory_space<vmem>>, %arg7: memref<1x128xf32, #tpu.memory_space<vmem>>, %arg8: memref<8x128xbf16, #tpu.memory_space<vmem>>) attributes {dimension_semantics = [#tpu.dimension_semantics<parallel>], iteration_bounds = array<i64: 1>, scalar_prefetch = 0 : i64, scratch_operands = 0 : i64, tpu.core_type = #tpu.core_type<tc>, window_params = [{transform_indices = @transform_0, window_bounds = array<i64: 8, 16>}, {pipeline_mode = #tpu.pipeline_mode<synchronous>, transform_indices = @transform_1, window_bounds = array<i64: 16, 512>}, {pipeline_mode = #tpu.pipeline_mode<synchronous>, transform_indices = @transform_2, window_bounds = array<i64: 1, 512>}, {pipeline_mode = #tpu.pipeline_mode<synchronous>, transform_indices = @transform_3, window_bounds = array<i64: 512, 384>}, {pipeline_mode = #tpu.pipeline_mode<synchronous>, transform_indices = @transform_4, window_bounds = array<i64: 1, 384>}, {pipeline_mode = #tpu.pipeline_mode<synchronous>, transform_indices = @transform_5, window_bounds = array<i64: 384, 128>}, {pipeline_mode = #tpu.pipeline_mode<synchronous>, transform_indices = @transform_6, window_bounds = array<i64: 1, 128>}, {transform_indices = @transform_7, window_bounds = array<i64: 8, 128>}]} {
    %c0 = arith.constant 0 : index
    %c0_0 = arith.constant 0 : index
    %0 = vector.load %arg1[%c0, %c0_0] : memref<8x16xbf16, #tpu.memory_space<vmem>>, vector<8x16xbf16>
    %c0_1 = arith.constant 0 : index
    %c0_2 = arith.constant 0 : index
    %1 = vector.load %arg2[%c0_1, %c0_2] : memref<16x512xbf16, #tpu.memory_space<vmem>>, vector<16x512xbf16>
    %cst = arith.constant dense<0.000000e+00> : vector<8x512xf32>
    %2 = tpu.matmul %0, %1, %cst {dimension_numbers = #tpu.dot_dimension_numbers<[1], [0], [0], [1], [0, 0, 1, 1], [], []>} : vector<8x16xbf16>, vector<16x512xbf16>, vector<8x512xf32> -> vector<8x512xf32>
    %c0_3 = arith.constant 0 : index
    %c0_4 = arith.constant 0 : index
    %3 = vector.load %arg3[%c0_3, %c0_4] : memref<1x512xf32, #tpu.memory_space<vmem>>, vector<1x512xf32>
    %4 = vector.broadcast %3 : vector<1x512xf32> to vector<8x512xf32>
    %5 = arith.addf %2, %4 : vector<8x512xf32>
    %cst_5 = arith.constant 0.000000e+00 : f32
    %6 = vector.broadcast %cst_5 : f32 to vector<8x512xf32>
    %7 = arith.maximumf %5, %6 : vector<8x512xf32>
    %8 = arith.truncf %7 : vector<8x512xf32> to vector<8x512xbf16>
    %c0_6 = arith.constant 0 : index
    %c0_7 = arith.constant 0 : index
    %9 = vector.load %arg4[%c0_6, %c0_7] : memref<512x384xbf16, #tpu.memory_space<vmem>>, vector<512x384xbf16>
    %cst_8 = arith.constant dense<0.000000e+00> : vector<8x384xf32>
    %10 = tpu.matmul %8, %9, %cst_8 {dimension_numbers = #tpu.dot_dimension_numbers<[1], [0], [0], [1], [0, 0, 1, 1], [], []>} : vector<8x512xbf16>, vector<512x384xbf16>, vector<8x384xf32> -> vector<8x384xf32>
    %c0_9 = arith.constant 0 : index
    %c0_10 = arith.constant 0 : index
    %11 = vector.load %arg5[%c0_9, %c0_10] : memref<1x384xf32, #tpu.memory_space<vmem>>, vector<1x384xf32>
    %12 = vector.broadcast %11 : vector<1x384xf32> to vector<8x384xf32>
    %13 = arith.addf %10, %12 : vector<8x384xf32>
    %cst_11 = arith.constant 0.000000e+00 : f32
    %14 = vector.broadcast %cst_11 : f32 to vector<8x384xf32>
    %15 = arith.maximumf %13, %14 : vector<8x384xf32>
    %16 = arith.truncf %15 : vector<8x384xf32> to vector<8x384xbf16>
    %c0_12 = arith.constant 0 : index
    %c0_13 = arith.constant 0 : index
    %17 = vector.load %arg6[%c0_12, %c0_13] : memref<384x128xbf16, #tpu.memory_space<vmem>>, vector<384x128xbf16>
    %cst_14 = arith.constant dense<0.000000e+00> : vector<8x128xf32>
    %18 = tpu.matmul %16, %17, %cst_14 {dimension_numbers = #tpu.dot_dimension_numbers<[1], [0], [0], [1], [0, 0, 1, 1], [], []>} : vector<8x384xbf16>, vector<384x128xbf16>, vector<8x128xf32> -> vector<8x128xf32>
    %c0_15 = arith.constant 0 : index
    %c0_16 = arith.constant 0 : index
    %19 = vector.load %arg7[%c0_15, %c0_16] : memref<1x128xf32, #tpu.memory_space<vmem>>, vector<1x128xf32>
    %20 = vector.broadcast %19 : vector<1x128xf32> to vector<8x128xf32>
    %21 = arith.addf %18, %20 : vector<8x128xf32>
    %22 = math.tanh %21 : vector<8x128xf32>
    %23 = arith.truncf %22 : vector<8x128xf32> to vector<8x128xbf16>
    %c0_17 = arith.constant 0 : index
    %c0_18 = arith.constant 0 : index
    %24 = vector.load %arg8[%c0_17, %c0_18] : memref<8x128xbf16, #tpu.memory_space<vmem>>, vector<8x128xbf16>
    tpu.vector_store %arg8[%c0_17, %c0_18], %23 {strides = array<i32>} : memref<8x128xbf16, #tpu.memory_space<vmem>>, vector<8x128xbf16>,
    return
  }
  func.func @transform_0(%arg0: i32) -> (i32, i32) {
    %c0_i32 = arith.constant 0 : i32
    %c0_i32_0 = arith.constant 0 : i32
    return %arg0, %c0_i32 : i32, i32
  }
  func.func @transform_1(%arg0: i32) -> (i32, i32) {
    %c0_i32 = arith.constant 0 : i32
    %c0_i32_0 = arith.constant 0 : i32
    %c0_i32_1 = arith.constant 0 : i32
    return %c0_i32, %c0_i32_0 : i32, i32
  }
  func.func @transform_2(%arg0: i32) -> (i32, i32) {
    %c0_i32 = arith.constant 0 : i32
    %c0_i32_0 = arith.constant 0 : i32
    %c0_i32_1 = arith.constant 0 : i32
    return %c0_i32, %c0_i32_0 : i32, i32
  }
  func.func @transform_3(%arg0: i32) -> (i32, i32) {
    %c0_i32 = arith.constant 0 : i32
    %c0_i32_0 = arith.constant 0 : i32
    %c0_i32_1 = arith.constant 0 : i32
    return %c0_i32, %c0_i32_0 : i32, i32
  }
  func.func @transform_4(%arg0: i32) -> (i32, i32) {
    %c0_i32 = arith.constant 0 : i32
    %c0_i32_0 = arith.constant 0 : i32
    %c0_i32_1 = arith.constant 0 : i32
    return %c0_i32, %c0_i32_0 : i32, i32
  }
  func.func @transform_5(%arg0: i32) -> (i32, i32) {
    %c0_i32 = arith.constant 0 : i32
    %c0_i32_0 = arith.constant 0 : i32
    %c0_i32_1 = arith.constant 0 : i32
    return %c0_i32, %c0_i32_0 : i32, i32
  }
  func.func @transform_6(%arg0: i32) -> (i32, i32) {
    %c0_i32 = arith.constant 0 : i32
    %c0_i32_0 = arith.constant 0 : i32
    %c0_i32_1 = arith.constant 0 : i32
    return %c0_i32, %c0_i32_0 : i32, i32
  }
  func.func @transform_7(%arg0: i32) -> (i32, i32) {
    %c0_i32 = arith.constant 0 : i32
    %c0_i32_0 = arith.constant 0 : i32
    return %arg0, %c0_i32 : i32, i32
  }
}

</mosaic_0001>

<bundles_post_ra>
// kernel: tpu_custom_call.1
= control target key start
LH: loop header
LB: loop body
LE: loop exit
PB: predicated region body
PF: predicated region fallthrough
CT: control target
= control target key end

     0   :  { %12 = vsyncpa [#allocation3], 0  ;;  %s2171_s0 = inlined_call_operand.hbm [shape: bf16[8,16], index: 0, kind: input, shape index: {}]   ;;  %s2172_s1 = inlined_call_operand.hbm [shape: bf16[16,512], index: 1, kind: input, shape index: {}]   ;;  %s2173_s2 = inlined_call_operand.hbm [shape: f32[1,512], index: 2, kind: input, shape index: {}]   ;;  %s2174_s3 = inlined_call_operand.hbm [shape: bf16[512,384], index: 3, kind: input, shape index: {}]   ;;  %s2175_s4 = inlined_call_operand.vmem [shape: f32[1,384], index: 4, kind: input, shape index: {}]   ;;  %s2176_s5 = inlined_call_operand.hbm [shape: bf16[384,128], index: 5, kind: input, shape index: {}]   ;;  %s2177_s6 = inlined_call_operand.vmem [shape: f32[1,128], index: 6, kind: input, shape index: {}]   ;;  %s2178_s7 = inlined_call_operand.hbm [shape: bf16[8,128], index: 7, kind: output, shape index: {}]  }
   0x1   :  { %13 = vsyncpa [#allocation6], 0 }
   0x2   :  { %14 = vsyncpa [#allocation9], 0  ;;  %s31_s26 = sshll.u32 %s2172_s1, 4  ;;  %s32_s26 = int_to_ptr.hbm [resolvable:$true] %s31_s26 }
   0x3   :  { %15 = vsyncpa [#allocation4], 0  ;;  %s2059_s27 = smov [#allocation5]   ;;  %s55_s8 = sshll.u32 %s2174_s3, 4  ;;  %s56_s8 = int_to_ptr.hbm [resolvable:$true] %s55_s8 }
   0x4   :  { %s33_s28 = sshll.u32 %s2059_s27, 4  ;;  %s2060_s9 = smov 256   ;;  %s34_s28 = int_to_ptr.vmem [resolvable:$true] %s33_s28 }
   0x5   :  { %s2061_s10 = smov 16   ;;  %s2062_s11 = smov [#allocation8]  }
   0x6   :  { %39 = dma.hbm_to_vmem [thread:$0]  %s32_s26, 512, %s34_s28, [#allocation6], %s2060_s9, %s2060_s9, %s2061_s10  }
   0x7   :  { %s57_s12 = sshll.u32 %s2062_s11, 4  ;;  %s2063_s13 = smov 192   ;;  %s58_s12 = int_to_ptr.vmem [resolvable:$true] %s57_s12 }
   0x8   :  { %s2064_s14 = smov 12   ;;  %s21_s16 = sshll.u32 %s2171_s0, 4  ;;  %s22_s16 = int_to_ptr.hbm [resolvable:$true] %s21_s16 }
   0x9   :  { %63 = dma.hbm_to_vmem [thread:$0]  %s56_s8, 12288, %s58_s12, [#allocation9], %s2063_s13, %s2063_s13, %s2064_s14  }
   0xa   :  { %s2065_s17 = smov [#allocation2]   ;;  %s45_s20 = sshll.u32 %s2173_s2, 4  ;;  %s46_s20 = int_to_ptr.hbm [resolvable:$true] %s45_s20 }
   0xb   :  { %s23_s18 = sshll.u32 %s2065_s17, 4  ;;  %s2066_s21 = smov [#allocation7]   ;;  %s24_s18 = int_to_ptr.vmem [resolvable:$true] %s23_s18 }
   0xc   :  { %26 = dma.hbm_to_vmem [thread:$0]  %s22_s16, 64, %s24_s18, [#allocation3]  }
   0xd   :  { %s47_s22 = sshll.u32 %s2066_s21, 4  ;;  %s70_s25 = sshll.u32 %s2176_s5, 4  ;;  %s48_s22 = int_to_ptr.vmem [resolvable:$true] %s47_s22  ;;  %s71_s25 = int_to_ptr.hbm [resolvable:$true] %s70_s25 }
   0xe   :  { %50 = dma.hbm_to_vmem [thread:$0]  %s46_s20, 64, %s48_s22, [#allocation6]  }
   0xf   :  { %s2067_s0 = smov [#allocation10]   ;;  %s2068_s27 = smov 64  }
  0x10   :  { %s72_s26 = sshll.u32 %s2067_s0, 4  ;;  %s2069_s28 = smov 4   ;;  %s73_s26 = int_to_ptr.vmem [resolvable:$true] %s72_s26 }
  0x11   :  { %78 = dma.hbm_to_vmem [thread:$0]  %s71_s25, 3072, %s73_s26, [#allocation9], %s2068_s27, %s2068_s27, %s2069_s28  }
  0x12   :  { %2051 = dma.done.wait [#allocation3], 64  }
  0x13   :  { %2052 = vsyncadd [#allocation3], 4294967232 }
  0x14   :  { %2053 = dma.done.wait [#allocation6], 576  }
  0x15   :  { %2054 = vsyncadd [#allocation6], 4294966720 }
  0x16   :  { %2055 = dma.done.wait [#allocation9], 15360  }
  0x17   :  { %2056 = vsyncadd [#allocation9], 4294951936  ;;  %vm137_vm0 = vcmask 130048   ;;  %v1270_v0 = vld [vmem:[#allocation5] sm:$0xf]  ;;  %s2070_s30 = smov [#allocation11]  }
  0x18   :  { %v1770_v1 = vld [vmem:[#allocation5 + $0xc] sm:$0xf0]  ;;  %v1768_v2 = vld [vmem:[#allocation5 + $0x4] sm:$0xf]  ;;  %v1272_v4 = vld [vmem:[#allocation5 + $0x10] sm:$0xf0] }
  0x19   :  { %v1271_v3 = vor.u32 %v1770_v1, %v1270_v0  ;;  %v1278_v5 = vld [vmem:[#allocation5 + $0x8] sm:$0xf]  ;;  %v1771_v6 = vld [vmem:[#allocation5 + $0x14] sm:$0xf0]  ;;  %v1275_v7 = vor.u32 %v1768_v2, %v1272_v4  ;;  %v2126_v9 = vld [vmem:[#allocation2] sm:$0xf] }
  0x1a   :  { %v1279_v8 = vor.u32 %v1771_v6, %v1278_v5  ;;  %v1769_v10 = vld [vmem:[#allocation5 + $0xc] sm:$0xf]  ;;  %v1280_v11 = vld [vmem:[#allocation5 + $0x18] sm:$0xf0]  ;;  %v1818_v14 = vld [vmem:[#allocation8 + $0x170] sm:$0xf0] }
  0x1b   :  { %148 = vmatpush.bf16.msra.mxu3 %v1271_v3  ;;  %v1283_v12 = vor.u32 %v1769_v10, %v1280_v11  ;;  %v1470_v13 = vld [vmem:[#allocation8 + $0x168] sm:$0xf]  ;;  %v1458_v15 = vld [vmem:[#allocation8 + $0x150] sm:$0xf]  ;;  %161 = vmatpush.bf16.msra.mxu1 %v1275_v7  ;;  %v1815_v17 = vld [vmem:[#allocation8 + $0x158] sm:$0xf0] }
  0x1c   :  { %174 = vmatpush.bf16.msra.mxu2 %v1279_v8  ;;  %v1471_v16 = vor.u32 %v1818_v14, %v1470_v13  ;;  %v1374_v18 = vld [vmem:[#allocation8 + $0xa8] sm:$0xf]  ;;  %v1794_v19 = vld [vmem:[#allocation8 + $0xb0] sm:$0xf0]  ;;  %v1459_v23 = vor.u32 %v1815_v17, %v1458_v15  ;;  %v1446_v25 = vld [vmem:[#allocation8 + $0x138] sm:$0xf] }
  0x1d   :  { %v1375_v20 = vor.u32 %v1794_v19, %v1374_v18  ;;  %v1566_v21 = vld [vmem:[#allocation8 + $0x228] sm:$0xf]  ;;  %v1842_v22 = vld [vmem:[#allocation8 + $0x230] sm:$0xf0]  ;;  %v1362_v26 = vld [vmem:[#allocation8 + $0x90] sm:$0xf] }
  0x1e   :  { %1284 = vmatmul.msk.bf16.vlgmr.msra.gmra.mxu3 %vm137_vm0, %v2126_v9  ;;  %v1567_v24 = vor.u32 %v1842_v22, %v1566_v21  ;;  %v1791_v27 = vld [vmem:[#allocation8 + $0x98] sm:$0xf0]  ;;  %1285 = vmatmul.msk.bf16.vlgmr.msra.gmra.mxu1 %vm137_vm0, %v2126_v9  ;;  %v1812_v28 = vld [vmem:[#allocation8 + $0x140] sm:$0xf0]  ;;  %v1554_v29 = vld [vmem:[#allocation8 + $0x210] sm:$0xf] }
  0x1f   :  { %187 = vmatpush.bf16.msrb.mxu3 %v1283_v12  ;;  %862 = vmatpush.bf16.msrb.mxu1 %v1471_v16  ;;  %v1839_v30 = vld [vmem:[#allocation8 + $0x218] sm:$0xf0]  ;;  %v1363_v31 = vor.u32 %v1791_v27, %v1362_v26  ;;  %v1350_v33 = vld [vmem:[#allocation8 + $0x78] sm:$0xf]  ;;  %v1788_v34 = vld [vmem:[#allocation8 + $0x80] sm:$0xf0]  ;;  %v1447_v37 = vor.u32 %v1812_v28, %v1446_v25 }
  0x20   :  { %1286 = vmatmul.msk.bf16.vlgmr.msra.gmra.mxu2 %vm137_vm0, %v2126_v9  ;;  %849 = vmatpush.bf16.msra.mxu0 %v1375_v20  ;;  %v1555_v32 = vor.u32 %v1839_v30, %v1554_v29  ;;  %v1542_v35 = vld [vmem:[#allocation8 + $0x1f8] sm:$0xf]  ;;  %v1836_v36 = vld [vmem:[#allocation8 + $0x200] sm:$0xf0]  ;;  %v1434_v38 = vld [vmem:[#allocation8 + $0x120] sm:$0xf]  ;;  %v1351_v40 = vor.u32 %v1788_v34, %v1350_v33 }
  0x21   :  { %875 = vmatpush.bf16.msrb.mxu2 %v1567_v24  ;;  %v1809_v39 = vld [vmem:[#allocation8 + $0x128] sm:$0xf0]  ;;  %v1543_v41 = vor.u32 %v1836_v36, %v1542_v35  ;;  %v1338_v42 = vld [vmem:[#allocation8 + $0x60] sm:$0xf]  ;;  %v1662_v46 = vld [vmem:[#allocation8 + $0x2e8] sm:$0xf] }
  0x22   :  { %v1785_v43 = vld [vmem:[#allocation8 + $0x68] sm:$0xf0]  ;;  %v1530_v44 = vld [vmem:[#allocation8 + $0x1e0] sm:$0xf]  ;;  %v1435_v47 = vor.u32 %v1809_v39, %v1434_v38  ;;  %v1866_v48 = vld [vmem:[#allocation8 + $0x2f0] sm:$0xf0] }
  0x23   :  { %863 = vmatpush.bf16.msrb.mxu1 %v1459_v23  ;;  %v1833_v45 = vld [vmem:[#allocation8 + $0x1e8] sm:$0xf0]  ;;  %v1422_v49 = vld [vmem:[#allocation8 + $0x108] sm:$0xf]  ;;  %v1806_v50 = vld [vmem:[#allocation8 + $0x110] sm:$0xf0]  ;;  %v1663_v51 = vor.u32 %v1866_v48, %v1662_v46  ;;  %v1339_v52 = vor.u32 %v1785_v43, %v1338_v42 }
  0x24   :  { %850 = vmatpush.bf16.msra.mxu0 %v1363_v31  ;;  %v1531_v53 = vor.u32 %v1833_v45, %v1530_v44  ;;  %v1326_v54 = vld [vmem:[#allocation8 + $0x48] sm:$0xf]  ;;  %v1650_v55 = vld [vmem:[#allocation8 + $0x2d0] sm:$0xf]  ;;  %v1863_v56 = vld [vmem:[#allocation8 + $0x2d8] sm:$0xf0]  ;;  %v1423_v61 = vor.u32 %v1806_v50, %v1422_v49 }
  0x25   :  { %876 = vmatpush.bf16.msrb.mxu2 %v1555_v32  ;;  %v1782_v57 = vld [vmem:[#allocation8 + $0x50] sm:$0xf0]  ;;  %v1518_v58 = vld [vmem:[#allocation8 + $0x1c8] sm:$0xf]  ;;  %888 = vmatpush.bf16.msra.mxu3 %v1663_v51  ;;  %v1651_v60 = vor.u32 %v1863_v56, %v1650_v55  ;;  %v1410_v62 = vld [vmem:[#allocation8 + $0xf0] sm:$0xf] }
  0x26   :  { %v1830_v59 = vld [vmem:[#allocation8 + $0x1d0] sm:$0xf0]  ;;  %v1803_v63 = vld [vmem:[#allocation8 + $0xf8] sm:$0xf0]  ;;  %v1638_v0 = vld [vmem:[#allocation8 + $0x2b8] sm:$0xf]  ;;  %v1327_v1 = vor.u32 %v1782_v57, %v1326_v54 }
  0x27   :  { %864 = vmatpush.bf16.msrb.mxu1 %v1447_v37  ;;  %v1519_v2 = vor.u32 %v1830_v59, %v1518_v58  ;;  %v1314_v3 = vld [vmem:[#allocation8 + $0x30] sm:$0xf]  ;;  %v1860_v4 = vld [vmem:[#allocation8 + $0x2c0] sm:$0xf0]  ;;  %v1779_v5 = vld [vmem:[#allocation8 + $0x38] sm:$0xf0]  ;;  %v1411_v10 = vor.u32 %v1803_v63, %v1410_v62 }
  0x28   :  { %851 = vmatpush.bf16.msra.mxu0 %v1351_v40  ;;  %v1506_v6 = vld [vmem:[#allocation8 + $0x1b0] sm:$0xf]  ;;  %v1827_v7 = vld [vmem:[#allocation8 + $0x1b8] sm:$0xf0]  ;;  %v1639_v8 = vor.u32 %v1860_v4, %v1638_v0  ;;  %v1626_v11 = vld [vmem:[#allocation8 + $0x2a0] sm:$0xf]  ;;  %v1315_v15 = vor.u32 %v1779_v5, %v1314_v3 }
  0x29   :  { %877 = vmatpush.bf16.msrb.mxu2 %v1543_v41  ;;  %889 = vmatpush.bf16.msra.mxu3 %v1651_v60  ;;  %v1857_v12 = vld [vmem:[#allocation8 + $0x2a8] sm:$0xf0]  ;;  %v1398_v13 = vld [vmem:[#allocation8 + $0xd8] sm:$0xf]  ;;  %v1800_v14 = vld [vmem:[#allocation8 + $0xe0] sm:$0xf0]  ;;  %v1507_v16 = vor.u32 %v1827_v7, %v1506_v6 }
  0x2a   :  { %v1302_v17 = vld [vmem:[#allocation8 + $0x18] sm:$0xf]  ;;  %v1776_v18 = vld [vmem:[#allocation8 + $0x20] sm:$0xf0]  ;;  %v1627_v21 = vor.u32 %v1857_v12, %v1626_v11  ;;  %v1399_v22 = vor.u32 %v1800_v14, %v1398_v13  ;;  %v1614_v23 = vld [vmem:[#allocation8 + $0x288] sm:$0xf] }
  0x2b   :  { %865 = vmatpush.bf16.msrb.mxu1 %v1435_v47  ;;  %v1494_v19 = vld [vmem:[#allocation8 + $0x198] sm:$0xf]  ;;  %v1824_v20 = vld [vmem:[#allocation8 + $0x1a0] sm:$0xf0]  ;;  %v1386_v24 = vld [vmem:[#allocation8 + $0xc0] sm:$0xf]  ;;  %v1303_v28 = vor.u32 %v1776_v18, %v1302_v17 }
  0x2c   :  { %852 = vmatpush.bf16.msra.mxu0 %v1339_v52  ;;  %v1797_v25 = vld [vmem:[#allocation8 + $0xc8] sm:$0xf0]  ;;  %v1472_v27 = vld [vmem:[#allocation8 + $0x174] sm:$0xf0]  ;;  %v1495_v29 = vor.u32 %v1824_v20, %v1494_v19  ;;  %v1290_v30 = vld [vmem:[#allocation8] sm:$0xf] }
  0x2d   :  { %878 = vmatpush.bf16.msrb.mxu2 %v1531_v53  ;;  %890 = vmatpush.bf16.msra.mxu3 %v1639_v8  ;;  %v1817_v26 = vld [vmem:[#allocation8 + $0x16c] sm:$0xf]  ;;  %v1482_v32 = vld [vmem:[#allocation8 + $0x180] sm:$0xf]  ;;  %v1387_v36 = vor.u32 %v1797_v25, %v1386_v24  ;;  %v1376_v37 = vld [vmem:[#allocation8 + $0xb4] sm:$0xf0] }
  0x2e   :  { %1287 = vmatmul.msk.bf16.vlgmr.msrb.gmra.mxu3 %vm137_vm0, %v2126_v9  ;;  %v1854_v9 = vld [vmem:[#allocation8 + $0x290] sm:$0xf0]  ;;  %v1773_v31 = vld [vmem:[#allocation8 + $0x8] sm:$0xf0]  ;;  %v1568_v39 = vld [vmem:[#allocation8 + $0x234] sm:$0xf0]  ;;  %v1475_v40 = vor.u32 %v1817_v26, %v1472_v27 }
  0x2f   :  { %866 = vmatpush.bf16.msrb.mxu1 %v1423_v61  ;;  %v1821_v33 = vld [vmem:[#allocation8 + $0x188] sm:$0xf0]  ;;  %v1615_v35 = vor.u32 %v1854_v9, %v1614_v23  ;;  %v1602_v41 = vld [vmem:[#allocation8 + $0x270] sm:$0xf]  ;;  %v1851_v42 = vld [vmem:[#allocation8 + $0x278] sm:$0xf0]  ;;  %v1291_v45 = vor.u32 %v1773_v31, %v1290_v30 }
  0x30   :  { %853 = vmatpush.bf16.msra.mxu0 %v1327_v1  ;;  %v1793_v34 = vld [vmem:[#allocation8 + $0xac] sm:$0xf]  ;;  %v1814_v43 = vld [vmem:[#allocation8 + $0x154] sm:$0xf]  ;;  %v1460_v44 = vld [vmem:[#allocation8 + $0x15c] sm:$0xf0]  ;;  %v1483_v46 = vor.u32 %v1821_v33, %v1482_v32  ;;  %v1603_v53 = vor.u32 %v1851_v42, %v1602_v41 }
  0x31   :  { %879 = vmatpush.bf16.msrb.mxu2 %v1519_v2  ;;  %891 = vmatpush.bf16.msra.mxu3 %v1627_v21  ;;  %v1841_v38 = vld [vmem:[#allocation8 + $0x22c] sm:$0xf]  ;;  %v1379_v47 = vor.u32 %v1793_v34, %v1376_v37  ;;  %v1790_v49 = vld [vmem:[#allocation8 + $0x94] sm:$0xf]  ;;  %v1364_v50 = vld [vmem:[#allocation8 + $0x9c] sm:$0xf0]  ;;  %v1463_v54 = vor.u32 %v1814_v43, %v1460_v44 }
  0x32   :  { %v1571_v48 = vor.u32 %v1841_v38, %v1568_v39  ;;  %v1838_v51 = vld [vmem:[#allocation8 + $0x214] sm:$0xf]  ;;  %v1556_v52 = vld [vmem:[#allocation8 + $0x21c] sm:$0xf0]  ;;  %v1590_v55 = vld [vmem:[#allocation8 + $0x258] sm:$0xf]  ;;  %v1367_v59 = vor.u32 %v1790_v49, %v1364_v50 }
  0x33   :  { %867 = vmatpush.bf16.msrb.mxu1 %v1411_v10  ;;  %v1848_v56 = vld [vmem:[#allocation8 + $0x260] sm:$0xf0]  ;;  %v1811_v57 = vld [vmem:[#allocation8 + $0x13c] sm:$0xf]  ;;  %v1448_v58 = vld [vmem:[#allocation8 + $0x144] sm:$0xf0]  ;;  %v1559_v60 = vor.u32 %v1838_v51, %v1556_v52 }
  0x34   :  { %854 = vmatpush.bf16.msra.mxu0 %v1315_v15  ;;  %v1787_v61 = vld [vmem:[#allocation8 + $0x7c] sm:$0xf]  ;;  %v1352_v62 = vld [vmem:[#allocation8 + $0x84] sm:$0xf0]  ;;  %v1591_v1 = vor.u32 %v1848_v56, %v1590_v55  ;;  %v1451_v2 = vor.u32 %v1811_v57, %v1448_v58  ;;  %v1808_v3 = vld [vmem:[#allocation8 + $0x124] sm:$0xf] }
  0x35   :  { %880 = vmatpush.bf16.msrb.mxu2 %v1507_v16  ;;  %892 = vmatpush.bf16.msra.mxu3 %v1615_v35  ;;  %v1835_v63 = vld [vmem:[#allocation8 + $0x1fc] sm:$0xf]  ;;  %v1544_v0 = vld [vmem:[#allocation8 + $0x204] sm:$0xf0]  ;;  %v1436_v4 = vld [vmem:[#allocation8 + $0x12c] sm:$0xf0]  ;;  %v1355_v5 = vor.u32 %v1787_v61, %v1352_v62 }
  0x36   :  { %v1547_v6 = vor.u32 %v1835_v63, %v1544_v0  ;;  %v1784_v7 = vld [vmem:[#allocation8 + $0x64] sm:$0xf]  ;;  %v1340_v8 = vld [vmem:[#allocation8 + $0x6c] sm:$0xf0]  ;;  %v1439_v12 = vor.u32 %v1808_v3, %v1436_v4  ;;  %v1805_v13 = vld [vmem:[#allocation8 + $0x10c] sm:$0xf] }
  0x37   :  { %868 = vmatpush.bf16.msrb.mxu1 %v1399_v22  ;;  %v1832_v10 = vld [vmem:[#allocation8 + $0x1e4] sm:$0xf]  ;;  %v1532_v11 = vld [vmem:[#allocation8 + $0x1ec] sm:$0xf0]  ;;  %v1424_v14 = vld [vmem:[#allocation8 + $0x114] sm:$0xf0]  ;;  %v1343_v15 = vor.u32 %v1784_v7, %v1340_v8 }
  0x38   :  { %855 = vmatpush.bf16.msra.mxu0 %v1303_v28  ;;  %v1535_v16 = vor.u32 %v1832_v10, %v1532_v11  ;;  %v1427_v17 = vor.u32 %v1805_v13, %v1424_v14  ;;  %v1802_v18 = vld [vmem:[#allocation8 + $0xf4] sm:$0xf]  ;;  %v1412_v19 = vld [vmem:[#allocation8 + $0xfc] sm:$0xf0]  ;;  %v1845_v22 = vld [vmem:[#allocation8 + $0x248] sm:$0xf0] }
  0x39   :  { %881 = vmatpush.bf16.msrb.mxu2 %v1495_v29  ;;  %893 = vmatpush.bf16.msra.mxu3 %v1603_v53  ;;  %v1415_v20 = vor.u32 %v1802_v18, %v1412_v19  ;;  %v1578_v21 = vld [vmem:[#allocation8 + $0x240] sm:$0xf]  ;;  %v1781_v9 = vld [vmem:[#allocation8 + $0x4c] sm:$0xf]  ;;  %v1328_v24 = vld [vmem:[#allocation8 + $0x54] sm:$0xf0] }
  0x3a   :  { %v1579_v23 = vor.u32 %v1845_v22, %v1578_v21  ;;  %v1829_v25 = vld [vmem:[#allocation8 + $0x1cc] sm:$0xf]  ;;  %v1331_v26 = vor.u32 %v1781_v9, %v1328_v24  ;;  %v1520_v27 = vld [vmem:[#allocation8 + $0x1d4] sm:$0xf0]  ;;  %v1799_v32 = vld [vmem:[#allocation8 + $0xdc] sm:$0xf] }
  0x3b   :  { %869 = vmatpush.bf16.msrb.mxu1 %v1387_v36  ;;  %v1865_v28 = vld [vmem:[#allocation8 + $0x2ec] sm:$0xf]  ;;  %v1664_v29 = vld [vmem:[#allocation8 + $0x2f4] sm:$0xf0]  ;;  %v1523_v30 = vor.u32 %v1829_v25, %v1520_v27  ;;  %v1400_v33 = vld [vmem:[#allocation8 + $0xe4] sm:$0xf0] }
  0x3c   :  { %856 = vmatpush.bf16.msra.mxu0 %v1291_v45  ;;  %v1667_v31 = vor.u32 %v1865_v28, %v1664_v29  ;;  %v1403_v34 = vor.u32 %v1799_v32, %v1400_v33  ;;  %v1778_v35 = vld [vmem:[#allocation8 + $0x34] sm:$0xf]  ;;  %v1316_v36 = vld [vmem:[#allocation8 + $0x3c] sm:$0xf0]  ;;  %v1796_v44 = vld [vmem:[#allocation8 + $0xc4] sm:$0xf] }
  0x3d   :  { %882 = vmatpush.bf16.msrb.mxu2 %v1483_v46  ;;  %894 = vmatpush.bf16.msra.mxu3 %v1591_v1  ;;  %v1826_v37 = vld [vmem:[#allocation8 + $0x1b4] sm:$0xf]  ;;  %v1319_v38 = vor.u32 %v1778_v35, %v1316_v36  ;;  %v1508_v39 = vld [vmem:[#allocation8 + $0x1bc] sm:$0xf0]  ;;  %v1388_v45 = vld [vmem:[#allocation8 + $0xcc] sm:$0xf0] }
  0x3e   :  { %v1652_v41 = vld [vmem:[#allocation8 + $0x2dc] sm:$0xf0]  ;;  %v1511_v42 = vor.u32 %v1826_v37, %v1508_v39  ;;  %v1391_v46 = vor.u32 %v1796_v44, %v1388_v45  ;;  %v1823_v49 = vld [vmem:[#allocation8 + $0x19c] sm:$0xf]  ;;  %v1496_v51 = vld [vmem:[#allocation8 + $0x1a4] sm:$0xf0] }
  0x3f   :  { %914 = vmatpush.bf16.msra.mxu1 %v1475_v40  ;;  %v1862_v40 = vld [vmem:[#allocation8 + $0x2d4] sm:$0xf]  ;;  %v1859_v52 = vld [vmem:[#allocation8 + $0x2bc] sm:$0xf]  ;;  %v1640_v53 = vld [vmem:[#allocation8 + $0x2c4] sm:$0xf0] }
  0x40   :  { %901 = vmatpush.bf16.msrb.mxu0 %v1379_v47  ;;  %v1655_v43 = vor.u32 %v1862_v40, %v1652_v41  ;;  %v1775_v47 = vld [vmem:[#allocation8 + $0x1c] sm:$0xf]  ;;  %v1643_v55 = vor.u32 %v1859_v52, %v1640_v53  ;;  %v1772_v56 = vld [vmem:[#allocation8 + $0x4] sm:$0xf]  ;;  %v1292_v57 = vld [vmem:[#allocation8 + $0xc] sm:$0xf0] }
  0x41   :  { %927 = vmatpush.bf16.msra.mxu2 %v1571_v48  ;;  %895 = vmatpush.bf16.msra.mxu3 %v1579_v23  ;;  %v1304_v48 = vld [vmem:[#allocation8 + $0x24] sm:$0xf0]  ;;  %v1820_v58 = vld [vmem:[#allocation8 + $0x184] sm:$0xf]  ;;  %v1628_v62 = vld [vmem:[#allocation8 + $0x2ac] sm:$0xf0] }
  0x42   :  { %v1307_v50 = vor.u32 %v1775_v47, %v1304_v48  ;;  %v1856_v61 = vld [vmem:[#allocation8 + $0x2a4] sm:$0xf]  ;;  %v1853_v1 = vld [vmem:[#allocation8 + $0x28c] sm:$0xf]  ;;  %v1850_v4 = vld [vmem:[#allocation8 + $0x274] sm:$0xf] }
  0x43   :  { %915 = vmatpush.bf16.msra.mxu1 %v1463_v54  ;;  %v1499_v54 = vor.u32 %v1823_v49, %v1496_v51  ;;  %v1631_v0 = vor.u32 %v1856_v61, %v1628_v62  ;;  %v1847_v7 = vld [vmem:[#allocation8 + $0x25c] sm:$0xf]  ;;  %v1592_v8 = vld [vmem:[#allocation8 + $0x264] sm:$0xf0]  ;;  %v1580_v13 = vld [vmem:[#allocation8 + $0x24c] sm:$0xf0] }
  0x44   :  { %902 = vmatpush.bf16.msrb.mxu0 %v1367_v59  ;;  %v1295_v59 = vor.u32 %v1772_v56, %v1292_v57  ;;  %v1595_v10 = vor.u32 %v1847_v7, %v1592_v8  ;;  %v2136_v11 = vld [vmem:[#allocation7] sm:$0xf]  ;;  %v1478_v18 = vld [vmem:[#allocation8 + $0x170] sm:$0xf]  ;;  %v1466_v25 = vld [vmem:[#allocation8 + $0x158] sm:$0xf] }
  0x45   :  { %928 = vmatpush.bf16.msra.mxu2 %v1559_v60  ;;  %940 = vmatpush.bf16.msrb.mxu3 %v1667_v31  ;;  %v1484_v60 = vld [vmem:[#allocation8 + $0x18c] sm:$0xf0]  ;;  %v1819_v19 = vld [vmem:[#allocation8 + $0x178] sm:$0xf0]  ;;  %v111_v22 = vperm.slane %v2136_v11, 2  ;;  %s1254_s8 = sshll.u32 %s2070_s30, 4  ;;  %s1255_s8 = int_to_ptr.vmem [resolvable:$true] %s1254_s8 }
  0x46   :  { %v1487_v63 = vor.u32 %v1820_v58, %v1484_v60  ;;  %v1479_v23 = vor.u32 %v1819_v19, %v1478_v18  ;;  %v1382_v29 = vld [vmem:[#allocation8 + $0xb0] sm:$0xf]  ;;  %v1843_v33 = vld [vmem:[#allocation8 + $0x238] sm:$0xf0]  ;;  %v1454_v39 = vld [vmem:[#allocation8 + $0x140] sm:$0xf] }
  0x47   :  { %916 = vmatpush.bf16.msra.mxu1 %v1451_v2  ;;  %v1616_v2 = vld [vmem:[#allocation8 + $0x294] sm:$0xf0]  ;;  %v1574_v32 = vld [vmem:[#allocation8 + $0x230] sm:$0xf]  ;;  %v1813_v40 = vld [vmem:[#allocation8 + $0x148] sm:$0xf0] }
  0x48   :  { %903 = vmatpush.bf16.msrb.mxu0 %v1355_v5  ;;  %v1619_v3 = vor.u32 %v1853_v1, %v1616_v2  ;;  %v1604_v5 = vld [vmem:[#allocation8 + $0x27c] sm:$0xf0]  ;;  %v1792_v44 = vld [vmem:[#allocation8 + $0xa0] sm:$0xf0]  ;;  %v1455_v48 = vor.u32 %v1813_v40, %v1454_v39  ;;  %v1442_v51 = vld [vmem:[#allocation8 + $0x128] sm:$0xf] }
  0x49   :  { %929 = vmatpush.bf16.msra.mxu2 %v1547_v6  ;;  %941 = vmatpush.bf16.msrb.mxu3 %v1655_v43  ;;  %v1607_v6 = vor.u32 %v1850_v4, %v1604_v5  ;;  %v1370_v43 = vld [vmem:[#allocation8 + $0x98] sm:$0xf]  ;;  %v1840_v47 = vld [vmem:[#allocation8 + $0x220] sm:$0xf0]  ;;  %v1810_v52 = vld [vmem:[#allocation8 + $0x130] sm:$0xf0] }
  0x4a   :  { %v1789_v56 = vld [vmem:[#allocation8 + $0x88] sm:$0xf0]  ;;  %v1550_v57 = vld [vmem:[#allocation8 + $0x200] sm:$0xf]  ;;  %v1430_v61 = vld [vmem:[#allocation8 + $0x110] sm:$0xf] }
  0x4b   :  { %917 = vmatpush.bf16.msra.mxu1 %v1439_v12  ;;  %v1844_v12 = vld [vmem:[#allocation8 + $0x244] sm:$0xf]  ;;  %v1837_v58 = vld [vmem:[#allocation8 + $0x208] sm:$0xf0]  ;;  %v1807_v62 = vld [vmem:[#allocation8 + $0x118] sm:$0xf0] }
  0x4c   :  { %904 = vmatpush.bf16.msrb.mxu0 %v1343_v15  ;;  %v1583_v14 = vor.u32 %v1844_v12, %v1580_v13  ;;  %v110_v15 = vperm.slane %v2136_v11, 1  ;;  %v1346_v1 = vld [vmem:[#allocation8 + $0x68] sm:$0xf]  ;;  %v1786_v2 = vld [vmem:[#allocation8 + $0x70] sm:$0xf0]  ;;  %v1431_v5 = vor.u32 %v1807_v62, %v1430_v61  ;;  %s1256_s11 = sshll.u32 %s2178_s7, 4  ;;  %s1257_s11 = int_to_ptr.hbm [resolvable:$true] %s1256_s11 }
  0x4d   :  { %930 = vmatpush.bf16.msra.mxu2 %v1535_v16  ;;  %942 = vmatpush.bf16.msrb.mxu3 %v1643_v55  ;;  %v1358_v55 = vld [vmem:[#allocation8 + $0x80] sm:$0xf]  ;;  %v1834_v4 = vld [vmem:[#allocation8 + $0x1f0] sm:$0xf0]  ;;  %v1347_v7 = vor.u32 %v1786_v2, %v1346_v1  ;;  %v1418_v8 = vld [vmem:[#allocation8 + $0xf8] sm:$0xf] }
  0x4e   :  { %v1359_v60 = vor.u32 %v1789_v56, %v1358_v55  ;;  %v1670_v19 = vld [vmem:[#allocation8 + $0x2f0] sm:$0xf]  ;;  %v1310_v39 = vld [vmem:[#allocation8 + $0x20] sm:$0xf]  ;;  %v1822_v55 = vld [vmem:[#allocation8 + $0x190] sm:$0xf0] }
  0x4f   :  { %918 = vmatpush.bf16.msra.mxu1 %v1427_v17  ;;  %v1634_v56 = vld [vmem:[#allocation8 + $0x2a8] sm:$0xf]  ;;  %v1622_v61 = vld [vmem:[#allocation8 + $0x290] sm:$0xf]  ;;  %v1855_v62 = vld [vmem:[#allocation8 + $0x298] sm:$0xf0] }
  0x50   :  { %905 = vmatpush.bf16.msrb.mxu0 %v1331_v26  ;;  %v1816_v26 = vld [vmem:[#allocation8 + $0x160] sm:$0xf0] }
  0x51   :  { %931 = vmatpush.bf16.msra.mxu2 %v1523_v30  ;;  %943 = vmatpush.bf16.msrb.mxu3 %v1631_v0  ;;  %v1795_v30 = vld [vmem:[#allocation8 + $0xb8] sm:$0xf0]  ;;  %v1467_v35 = vor.u32 %v1816_v26, %v1466_v25  ;;  %v1551_v0 = vor.u32 %v1837_v58, %v1550_v57  ;;  %v1322_v26 = vld [vmem:[#allocation8 + $0x38] sm:$0xf]  ;;  %v1858_v57 = vld [vmem:[#allocation8 + $0x2b0] sm:$0xf0] }
  0x52   :  { %v1852_v1 = vld [vmem:[#allocation8 + $0x280] sm:$0xf0] }
  0x53   :  { %919 = vmatpush.bf16.msra.mxu1 %v1415_v20  ;;  %v109_v20 = vperm.slane %v2136_v11, 0 }
  0x54   :  { %906 = vmatpush.bf16.msrb.mxu0 %v1319_v38  ;;  %v1383_v38 = vor.u32 %v1795_v30, %v1382_v29  ;;  %v1514_v29 = vld [vmem:[#allocation8 + $0x1b8] sm:$0xf]  ;;  %v1828_v30 = vld [vmem:[#allocation8 + $0x1c0] sm:$0xf0] }
  0x55   :  { %932 = vmatpush.bf16.msra.mxu2 %v1511_v42  ;;  %944 = vmatpush.bf16.msrb.mxu3 %v1619_v3  ;;  %v1575_v42 = vor.u32 %v1843_v33, %v1574_v32  ;;  %v1538_v3 = vld [vmem:[#allocation8 + $0x1e8] sm:$0xf]  ;;  %v1658_v32 = vld [vmem:[#allocation8 + $0x2d8] sm:$0xf]  ;;  %v1864_v33 = vld [vmem:[#allocation8 + $0x2e0] sm:$0xf0] }
  0x56   :  { %v1539_v13 = vor.u32 %v1834_v4, %v1538_v3  ;;  %v1659_v40 = vor.u32 %v1864_v33, %v1658_v32  ;;  %v1598_v3 = vld [vmem:[#allocation8 + $0x260] sm:$0xf]  ;;  %v1849_v4 = vld [vmem:[#allocation8 + $0x268] sm:$0xf0] }
  0x57   :  { %920 = vmatpush.bf16.msra.mxu1 %v1403_v34  ;;  %v1888_v32 = vld [vmem:[#allocation10 + $0xa0] sm:$0xff] }
  0x58   :  { %907 = vmatpush.bf16.msrb.mxu0 %v1307_v50  ;;  %v1371_v50 = vor.u32 %v1792_v44, %v1370_v43  ;;  %v1502_v43 = vld [vmem:[#allocation8 + $0x1a0] sm:$0xf]  ;;  %v1825_v44 = vld [vmem:[#allocation8 + $0x1a8] sm:$0xf0] }
  0x59   :  { %933 = vmatpush.bf16.msra.mxu2 %v1499_v54  ;;  %945 = vmatpush.bf16.msrb.mxu3 %v1607_v6 }
  0x5b   :  { %921 = vmatpush.bf16.msra.mxu1 %v1391_v46  ;;  %v1562_v46 = vld [vmem:[#allocation8 + $0x218] sm:$0xf] }
  0x5c   :  { %908 = vmatpush.bf16.msrb.mxu0 %v1295_v59  ;;  %v1563_v53 = vor.u32 %v1840_v47, %v1562_v46  ;;  %v1443_v59 = vor.u32 %v1810_v52, %v1442_v51  ;;  %v1646_v47 = vld [vmem:[#allocation8 + $0x2c0] sm:$0xf]  ;;  %v1298_v51 = vld [vmem:[#allocation8 + $0x8] sm:$0xf] }
  0x5d   :  { %934 = vmatpush.bf16.msra.mxu2 %v1487_v63  ;;  %946 = vmatpush.bf16.msrb.mxu3 %v1595_v10  ;;  %v112_v63 = vperm.slane %v2136_v11, 3  ;;  %v1804_v10 = vld [vmem:[#allocation8 + $0x100] sm:$0xf0]  ;;  %v1526_v11 = vld [vmem:[#allocation8 + $0x1d0] sm:$0xf] }
  0x5e   :  { %v1419_v18 = vor.u32 %v1804_v10, %v1418_v8  ;;  %v1875_v8 = vld [vmem:[#allocation10 + $0x38] sm:$0xff]  ;;  %v1874_v10 = vld [vmem:[#allocation10 + $0x30] sm:$0xff] }
  0x61   :  { %947 = vmatpush.bf16.msrb.mxu3 %v1583_v14  ;;  %v1334_v14 = vld [vmem:[#allocation8 + $0x50] sm:$0xf] }
  0x9b   :  { %v163_v16 = vpop.f32.mrf.mxu1 }
  0x9c   :  { %v164_v17 = vadd.f32 %v163_v16, %v110_v15  ;;  %v1783_v15 = vld [vmem:[#allocation8 + $0x58] sm:$0xf0] }
  0x9d   :  { %v1831_v16 = vld [vmem:[#allocation8 + $0x1d8] sm:$0xf0] }
  0x9e   :  { %v194_v21 = vmax.f32 %v164_v17, 0.0  ;;  %v1527_v25 = vor.u32 %v1831_v16, %v1526_v11  ;;  %v1869_v11 = vld [vmem:[#allocation10 + $0x8] sm:$0xff] }
  0x9f   :  { %v1881_v16 = vld [vmem:[#allocation10 + $0x68] sm:$0xff] }
  0xa0   :  { %v2141_v9 = vpack.c.bf16 %v194_v21, %v194_v21  ;;  %v1406_v21 = vld [vmem:[#allocation8 + $0xe0] sm:$0xf] }
  0xa1   :  { %v150_v24 = vpop.f32.mrf.mxu3 }
  0xa2   :  { %v151_v27 = vadd.f32 %v150_v24, %v109_v20  ;;  %870 = vmatmul.bf16.vlgmr.msrb.gmra.mxu1 %v2141_v9  ;;  %v1867_v20 = vld [vmem:[#allocation8 + $0x2f8] sm:$0xf0]  ;;  %v1335_v24 = vor.u32 %v1783_v15, %v1334_v14  ;;  %v1870_v14 = vld [vmem:[#allocation10 + $0x10] sm:$0xff] }
  0xa3   :  { %v176_v28 = vpop.f32.mrf.mxu2  ;;  %966 = vmatpush.bf16.msrb.mxu1 %v1479_v23  ;;  %v165_v36 = vpop.f32.mrf.mxu1  ;;  %v1882_v15 = vld [vmem:[#allocation10 + $0x70] sm:$0xff] }
  0xa4   :  { %v177_v31 = vadd.f32 %v176_v28, %v111_v22  ;;  %v193_v34 = vmax.f32 %v151_v27, 0.0  ;;  %v1801_v22 = vld [vmem:[#allocation8 + $0xe8] sm:$0xf0]  ;;  %v1671_v27 = vor.u32 %v1867_v20, %v1670_v19  ;;  %v1780_v28 = vld [vmem:[#allocation8 + $0x40] sm:$0xf0]  ;;  %v1879_v20 = vld [vmem:[#allocation10 + $0x58] sm:$0xff] }
  0xa5   :  { %v1798_v36 = vld [vmem:[#allocation8 + $0xd0] sm:$0xf0] }
  0xa6   :  { %v195_v37 = vmax.f32 %v177_v31, 0.0  ;;  %v2144_v41 = vpack.c.bf16 %v193_v34, %v193_v34  ;;  %v1407_v31 = vor.u32 %v1801_v22, %v1406_v21  ;;  %v1891_v21 = vld [vmem:[#allocation10 + $0xb8] sm:$0xff] }
  0xa7   :  { %967 = vmatpush.bf16.msrb.mxu1 %v1467_v35  ;;  %v1394_v35 = vld [vmem:[#allocation8 + $0xc8] sm:$0xf] }
  0xa8   :  { %v2146_v45 = vpack.c.bf16 %v195_v37, %v195_v37  ;;  %857 = vmatmul.bf16.vlgmr.msra.gmra.mxu0 %v2144_v41  ;;  %v1323_v37 = vor.u32 %v1780_v28, %v1322_v26  ;;  %v1395_v46 = vor.u32 %v1798_v36, %v1394_v35  ;;  %v1877_v26 = vld [vmem:[#allocation10 + $0x48] sm:$0xff]  ;;  %v1887_v35 = vld [vmem:[#allocation10 + $0x98] sm:$0xff] }
  0xa9   :  { %v152_v49 = vpop.f32.mrf.mxu3  ;;  %953 = vmatpush.bf16.msra.mxu0 %v1383_v38  ;;  %v1515_v38 = vor.u32 %v1828_v30, %v1514_v29  ;;  %v329_v29 = vld [vmem:[%s2175_s4] sm:$0x7] }
  0xaa   :  { %883 = vmatmul.bf16.vlgmr.msrb.gmra.mxu2 %v2146_v45  ;;  %v331_v33 = vperm.slane %v329_v29, 0 }
  0xab   :  { %979 = vmatpush.bf16.msrb.mxu2 %v1575_v42  ;;  %v178_v54 = vpop.f32.mrf.mxu2  ;;  %968 = vmatpush.bf16.msrb.mxu1 %v1455_v48  ;;  %v1777_v42 = vld [vmem:[#allocation8 + $0x28] sm:$0xf0] }
  0xac   :  { %v1861_v48 = vld [vmem:[#allocation8 + $0x2c8] sm:$0xf0]  ;;  %v1311_v49 = vor.u32 %v1777_v42, %v1310_v39  ;;  %v1490_v54 = vld [vmem:[#allocation8 + $0x188] sm:$0xf] }
  0xad   :  { %954 = vmatpush.bf16.msra.mxu0 %v1371_v50  ;;  %v1503_v50 = vor.u32 %v1825_v44, %v1502_v43  ;;  %v1647_v52 = vor.u32 %v1861_v48, %v1646_v47 }
  0xaf   :  { %980 = vmatpush.bf16.msrb.mxu2 %v1563_v53  ;;  %969 = vmatpush.bf16.msrb.mxu1 %v1443_v59  ;;  %v1774_v53 = vld [vmem:[#allocation8 + $0x10] sm:$0xf0]  ;;  %v1491_v59 = vor.u32 %v1822_v55, %v1490_v54 }
  0xb0   :  { %v1299_v58 = vor.u32 %v1774_v53, %v1298_v51  ;;  %v1884_v51 = vld [vmem:[#allocation10 + $0x80] sm:$0xff] }
  0xb1   :  { %v189_v6 = vpop.f32.mrf.mxu3  ;;  %955 = vmatpush.bf16.msra.mxu0 %v1359_v60  ;;  %v1635_v60 = vor.u32 %v1858_v57, %v1634_v56 }
  0xb2   :  { %v190_v12 = vadd.f32 %v189_v6, %v112_v63  ;;  %922 = vmatmul.bf16.vlgmr.msra.gmra.mxu1 %v2141_v9  ;;  %v1623_v63 = vor.u32 %v1855_v62, %v1622_v61  ;;  %v1846_v6 = vld [vmem:[#allocation8 + $0x250] sm:$0xf0] }
  0xb3   :  { %981 = vmatpush.bf16.msrb.mxu2 %v1551_v0  ;;  %970 = vmatpush.bf16.msrb.mxu1 %v1431_v5  ;;  %v1610_v0 = vld [vmem:[#allocation8 + $0x278] sm:$0xf]  ;;  %v1586_v5 = vld [vmem:[#allocation8 + $0x248] sm:$0xf] }
  0xb4   :  { %v196_v17 = vmax.f32 %v190_v12, 0.0  ;;  %v1611_v2 = vor.u32 %v1852_v1, %v1610_v0  ;;  %v1871_v12 = vld [vmem:[#allocation10 + $0x18] sm:$0xff] }
  0xb5   :  { %956 = vmatpush.bf16.msra.mxu0 %v1347_v7  ;;  %v1587_v7 = vor.u32 %v1846_v6, %v1586_v5 }
  0xb6   :  { %v2152_v23 = vpack.c.bf16 %v196_v17, %v196_v17  ;;  %v1868_v17 = vld [vmem:[#allocation10] sm:$0xff] }
  0xb7   :  { %982 = vmatpush.bf16.msrb.mxu2 %v1539_v13  ;;  %971 = vmatpush.bf16.msrb.mxu1 %v1419_v18  ;;  %v1883_v13 = vld [vmem:[#allocation10 + $0x78] sm:$0xff]  ;;  %v1880_v18 = vld [vmem:[#allocation10 + $0x60] sm:$0xff] }
  0xb8   :  { %896 = vmatmul.bf16.vlgmr.msra.gmra.mxu3 %v2152_v23  ;;  %909 = vmatmul.bf16.vlgmr.msrb.gmra.mxu0 %v2144_v41 }
  0xb9   :  { %v191_v34 = vpop.f32.mrf.mxu3  ;;  %957 = vmatpush.bf16.msra.mxu0 %v1335_v24  ;;  %992 = vmatpush.bf16.msra.mxu3 %v1671_v27  ;;  %v1890_v24 = vld [vmem:[#allocation10 + $0xb0] sm:$0xff]  ;;  %v1889_v27 = vld [vmem:[#allocation10 + $0xa8] sm:$0xff] }
  0xba   :  { %935 = vmatmul.bf16.vlgmr.msra.gmra.mxu2 %v2146_v45 }
  0xbb   :  { %983 = vmatpush.bf16.msrb.mxu2 %v1527_v25  ;;  %972 = vmatpush.bf16.msrb.mxu1 %v1407_v31  ;;  %v1876_v31 = vld [vmem:[#allocation10 + $0x40] sm:$0xff] }
  0xbd   :  { %958 = vmatpush.bf16.msra.mxu0 %v1323_v37  ;;  %993 = vmatpush.bf16.msra.mxu3 %v1659_v40 }
  0xbf   :  { %984 = vmatpush.bf16.msrb.mxu2 %v1515_v38  ;;  %973 = vmatpush.bf16.msrb.mxu1 %v1395_v46  ;;  %v1886_v38 = vld [vmem:[#allocation10 + $0x90] sm:$0xff]  ;;  %v1885_v46 = vld [vmem:[#allocation10 + $0x88] sm:$0xff] }
  0xc1   :  { %959 = vmatpush.bf16.msra.mxu0 %v1311_v49  ;;  %994 = vmatpush.bf16.msra.mxu3 %v1647_v52  ;;  %v332_v52 = vperm.slane %v329_v29, 1 }
  0xc2   :  { %974 = vmatmul.bf16.vlgmr.msrb.gmra.mxu1 %v2141_v9  ;;  %v1599_v9 = vor.u32 %v1849_v4, %v1598_v3  ;;  %v333_v4 = vperm.slane %v329_v29, 2 }
  0xc3   :  { %985 = vmatpush.bf16.msrb.mxu2 %v1503_v50  ;;  %1220 = vmatpush.bf16.msra.mxu1 %v1883_v13 }
  0xc5   :  { %960 = vmatpush.bf16.msra.mxu0 %v1299_v58  ;;  %995 = vmatpush.bf16.msra.mxu3 %v1635_v60 }
  0xc7   :  { %986 = vmatpush.bf16.msrb.mxu2 %v1491_v59  ;;  %1221 = vmatpush.bf16.msra.mxu1 %v1882_v15 }
  0xc8   :  { %948 = vmatmul.bf16.vlgmr.msrb.gmra.mxu3 %v2152_v23  ;;  %961 = vmatmul.bf16.vlgmr.msra.gmra.mxu0 %v2144_v41  ;;  %v1873_v41 = vld [vmem:[#allocation10 + $0x28] sm:$0xff] }
  0xc9   :  { %996 = vmatpush.bf16.msra.mxu3 %v1623_v63  ;;  %1207 = vmatpush.bf16.msrb.mxu0 %v1875_v8 }
  0xca   :  { %987 = vmatmul.bf16.vlgmr.msrb.gmra.mxu2 %v2146_v45  ;;  %v1872_v45 = vld [vmem:[#allocation10 + $0x20] sm:$0xff] }
  0xcb   :  { %1222 = vmatpush.bf16.msra.mxu1 %v1881_v16  ;;  %1233 = vmatpush.bf16.msra.mxu2 %v1891_v21 }
  0xcd   :  { %997 = vmatpush.bf16.msra.mxu3 %v1611_v2  ;;  %1208 = vmatpush.bf16.msrb.mxu0 %v1874_v10 }
  0xcf   :  { %1223 = vmatpush.bf16.msra.mxu1 %v1880_v18  ;;  %1234 = vmatpush.bf16.msra.mxu2 %v1890_v24 }
  0xd1   :  { %998 = vmatpush.bf16.msra.mxu3 %v1599_v9  ;;  %1209 = vmatpush.bf16.msrb.mxu0 %v1873_v41 }
  0xd3   :  { %1224 = vmatpush.bf16.msra.mxu1 %v1879_v20  ;;  %1235 = vmatpush.bf16.msra.mxu2 %v1889_v27 }
  0xd5   :  { %999 = vmatpush.bf16.msra.mxu3 %v1587_v7  ;;  %1210 = vmatpush.bf16.msrb.mxu0 %v1872_v45 }
  0xd7   :  { %1236 = vmatpush.bf16.msra.mxu2 %v1888_v32 }
  0xd8   :  { %1000 = vmatmul.bf16.vlgmr.msra.gmra.mxu3 %v2152_v23  ;;  %v1878_v23 = vld [vmem:[#allocation10 + $0x50] sm:$0xff] }
  0xd9   :  { %1211 = vmatpush.bf16.msrb.mxu0 %v1871_v12  ;;  %1225 = vmatpush.bf16.msra.mxu1 %v1878_v23 }
  0xdb   :  { %1237 = vmatpush.bf16.msra.mxu2 %v1887_v35 }
  0xdd   :  { %1212 = vmatpush.bf16.msrb.mxu0 %v1870_v14  ;;  %1226 = vmatpush.bf16.msra.mxu1 %v1877_v26 }
  0xdf   :  { %1238 = vmatpush.bf16.msra.mxu2 %v1886_v38 }
  0xe1   :  { %1213 = vmatpush.bf16.msrb.mxu0 %v1869_v11  ;;  %1227 = vmatpush.bf16.msra.mxu1 %v1876_v31 }
  0xe3   :  { %1239 = vmatpush.bf16.msra.mxu2 %v1885_v46 }
  0xe5   :  { %1214 = vmatpush.bf16.msrb.mxu0 %v1868_v17  ;;  %v1904_v17 = vld [vmem:[%s2177_s6] ss:$0 sm:$0xff] }
  0xe7   :  { %1240 = vmatpush.bf16.msra.mxu2 %v1884_v51 }
 0x11f   :  { %v871_v19 = vpop.f32.mrf.mxu1 }
 0x125   :  { %v858_v22 = vpop.f32.mrf.mxu0 }
 0x126   :  { %v859_v36 = vadd.f32 %v858_v22, %v331_v33 }
 0x127   :  { %v873_v25 = vpop.f32.mrf.mxu1 }
 0x128   :  { %v872_v40 = vadd.f32 %v871_v19, %v859_v36 }
 0x12d   :  { %v884_v28 = vpop.f32.mrf.mxu2  ;;  %v860_v30 = vpop.f32.mrf.mxu0 }
 0x12e   :  { %v885_v43 = vadd.f32 %v884_v28, %v872_v40 }
 0x12f   :  { %v923_v34 = vpop.f32.mrf.mxu1 }
 0x135   :  { %v886_v37 = vpop.f32.mrf.mxu2  ;;  %v910_v39 = vpop.f32.mrf.mxu0 }
 0x136   :  { %v911_v56 = vadd.f32 %v910_v39, %v332_v52 }
 0x137   :  { %v925_v42 = vpop.f32.mrf.mxu1 }
 0x138   :  { %v924_v59 = vadd.f32 %v923_v34, %v911_v56 }
 0x13b   :  { %v897_v44 = vpop.f32.mrf.mxu3 }
 0x13c   :  { %v898_v47 = vadd.f32 %v897_v44, %v885_v43 }
 0x13d   :  { %v936_v48 = vpop.f32.mrf.mxu2  ;;  %v912_v50 = vpop.f32.mrf.mxu0 }
 0x13e   :  { %v1005_v49 = vmax.f32 %v898_v47, 0.0  ;;  %v937_v61 = vadd.f32 %v936_v48, %v924_v59 }
 0x13f   :  { %v975_v54 = vpop.f32.mrf.mxu1 }
 0x140   :  { %v1008_v53 = vpack.c.bf16 %v1005_v49, %v1005_v49 }
 0x142   :  { %1215 = vmatmul.bf16.vlgmr.msrb.gmra.mxu0 %v1008_v53 }
 0x143   :  { %v899_v55 = vpop.f32.mrf.mxu3 }
 0x145   :  { %v938_v57 = vpop.f32.mrf.mxu2  ;;  %v962_v58 = vpop.f32.mrf.mxu0 }
 0x146   :  { %v963_v6 = vadd.f32 %v962_v58, %v333_v4 }
 0x147   :  { %v977_v60 = vpop.f32.mrf.mxu1 }
 0x148   :  { %v976_v7 = vadd.f32 %v975_v54, %v963_v6 }
 0x14b   :  { %v949_v62 = vpop.f32.mrf.mxu3 }
 0x14c   :  { %v950_v63 = vadd.f32 %v949_v62, %v937_v61 }
 0x14d   :  { %v988_v0 = vpop.f32.mrf.mxu2  ;;  %v964_v2 = vpop.f32.mrf.mxu0 }
 0x14e   :  { %v1006_v1 = vmax.f32 %v950_v63, 0.0  ;;  %v989_v8 = vadd.f32 %v988_v0, %v976_v7 }
 0x150   :  { %v1009_v3 = vpack.c.bf16 %v1006_v1, %v1006_v1 }
 0x152   :  { %1228 = vmatmul.bf16.vlgmr.msra.gmra.mxu1 %v1009_v3 }
 0x153   :  { %v951_v9 = vpop.f32.mrf.mxu3 }
 0x155   :  { %v990_v5 = vpop.f32.mrf.mxu2 }
 0x15b   :  { %v1001_v10 = vpop.f32.mrf.mxu3 }
 0x15c   :  { %v1002_v41 = vadd.f32 %v1001_v10, %v989_v8 }
 0x15e   :  { %v1007_v45 = vmax.f32 %v1002_v41, 0.0 }
 0x160   :  { %v1010_v12 = vpack.c.bf16 %v1007_v45, %v1007_v45 }
 0x162   :  { %1241 = vmatmul.bf16.vlgmr.msra.gmra.mxu2 %v1010_v12 }
 0x163   :  { %v1003_v13 = vpop.f32.mrf.mxu3 }
 0x1bf   :  { %v1216_v14 = vpop.f32.mrf.mxu0 }
 0x1c0   :  { %v1217_v18 = vadd.f32 %v1904_v17, %v1216_v14 }
 0x1c7   :  { %v1218_v15 = vpop.f32.mrf.mxu0 }
 0x1cf   :  { %v1229_v11 = vpop.f32.mrf.mxu1 }
 0x1d0   :  { %v1230_v19 = vadd.f32 %v1229_v11, %v1217_v18 }
 0x1d7   :  { %v1231_v16 = vpop.f32.mrf.mxu1 }
 0x1e5   :  { %v1242_v20 = vpop.f32.mrf.mxu2 }
 0x1e6   :  { %v1243_v21 = vadd.f32 %v1242_v20, %v1230_v19 }
 0x1e8   :  { %1905 = vtanh.f32 %v1243_v21 }
 0x1ed   :  { %v1244_v22 = vpop.f32.mrf.mxu2 }
 0x1ee   :  { %v1906_v23 = vpop.eup %1905 }
 0x1ef   :  { %v1247_v24 = vpack.c.bf16 %v1906_v23, %v1906_v23 }
 0x1f1   :  { %1248 = vst [vmem:[#allocation11] sm:$0xf] %v1247_v24 }
 0x1f2   :  { %1259 = dma.vmem_to_hbm [thread:$0]  %s1255_s8, 64, %s1257_s11, [#allocation4]  }
 0x1f3   :  { %2057 = dma.done.wait [#allocation4], 64  }
 0x1f4   :  { %2058 = vsyncadd [#allocation4], 4294967232 }
 0x1f5   :  { %1264 = vsyncpa [#allocation3], 1 }
 0x1f6   :  { %1265 = vsyncpa [#allocation6], 1 }
 0x1f7   :  { %1266 = vsyncpa [#allocation9], 1 }
 0x1f8   :  { %1267 = vsyncpa [#allocation4], 1 }

</bundles_post_ra>
